<compile_context>
chip_gen: v7x
topology: tpu7x:2x2x1
jax: 0.10.0
libtpu: 0.0.40
codegen_flags: <defaults>
</compile_context>

<pallas_src>
from functools import partial

import numpy as np
import jax
import jax.numpy as jnp
from jax.experimental import pallas as pl
from jax.experimental.pallas import tpu as pltpu


def _proportional_kernel(x_ref, w_ref, o_ref):
    """One (row-tile, col-tile): out = x_tile @ w_tile (single MXU matmul)."""
    o_ref[...] = jnp.dot(
        x_ref[...], w_ref[...], preferred_element_type=jnp.float32
    ).astype(o_ref.dtype)


def _round_up(a: int, b: int) -> int:
    return ((a + b - 1) // b) * b


def _tpu_vmem_capacity_bytes() -> int:
    try:
        cap = int(pltpu.get_tpu_info().vmem_capacity_bytes)
        if cap > 0:
            return cap
    except Exception:
        pass
    return 64 << 20  # conservative default (v7x has the smallest VMEM)


def _tpu_num_tensorcores() -> int:
    try:
        info = pltpu.get_tpu_info()
        for name in ("num_cores", "core_count", "num_tensorcores",
                     "tensor_cores_per_chip"):
            v = getattr(info, name, None)
            if isinstance(v, int) and v > 0:
                return v
    except Exception:
        pass
    return 1


def prepare_proportional_weights(weights, *, dtype=None):
    """Collapse the bias-free linear chain into ONE (optionally lane-packed)
    matrix.  Call this ONCE at model-build time and reuse the result for every
    forward call (the chain collapse / kron never re-runs per step).

    weights : list of (nodes[i], nodes[i+1]) matrices
    dtype   : operand dtype for the kernel (e.g. jnp.bfloat16 halves HBM traffic)
    Returns (w_prepared, p) with w_prepared of shape (p*in_dim, p*out_dim).
    """
    w_np = np.asarray(weights[0], dtype=np.float32)
    for wi in weights[1:]:
        w_np = w_np @ np.asarray(wi, dtype=np.float32)       # exact f32 host collapse
    in_dim, out_dim = int(w_np.shape[0]), int(w_np.shape[1])

    if dtype is None:
        dtype = jnp.asarray(weights[0]).dtype
    itemsize = jnp.dtype(dtype).itemsize

    # Lane packing: pack p logical rows per physical row via a block-diagonal
    # weight so the kernel's last (lane) dims stay wide / stores unmasked.
    p = 1
    if 0 < out_dim < 128 and 128 % out_dim == 0:
        p = 128 // out_dim
        # Cap p so (a) dense-K stays small and (b) the p-fold MXU FLOP
        # inflation keeps the kernel memory-bound on every generation
        # (f32 operands get a tighter cap than bf16).
        max_inflate = 8 if itemsize <= 2 else 4
        while p > 1 and (p > max_inflate or p * in_dim > 2048):
            p //= 2
    if p > 1:
        w_np = np.kron(np.eye(p, dtype=np.float32), w_np)     # block-diagonal

    return jnp.asarray(w_np).astype(dtype), p


@partial(jax.jit, static_argnames=("p", "vmem_budget_bytes"))
def proportional_forward(x, w, *, p=1, vmem_budget_bytes=None):
    """Apply the collapsed Proportional weight to the last axis of x.

    x : (..., in_dim)   (cast to w.dtype on the fly)
    w : prepared weight from `prepare_proportional_weights`, (p*in_dim, p*out_dim)
    """
    k_dim, n_dim = int(w.shape[0]), int(w.shape[1])
    in_dim, out_dim = k_dim // p, n_dim // p
    assert x.shape[-1] == in_dim, (x.shape, in_dim, p)
    lead_shape = x.shape[:-1]

    dtype = w.dtype
    x = x.astype(dtype)
    itemsize = jnp.dtype(dtype).itemsize

    # --- flatten rows; pad only to the lane-packing granularity (rare/cheap).
    x2d = x.reshape(-1, in_dim)
    m = x2d.shape[0]
    pad = (-m) % p
    if pad:
        x2d = jnp.pad(x2d, ((0, pad), (0, 0)))
    m_pad = m + pad
    mp = m_pad // p
    x2d = x2d.reshape(mp, k_dim)          # contiguous row-major -> cheap view

    # --- per-generation VMEM budget -> tile sizes --------------------------
    vmem_cap = _tpu_vmem_capacity_bytes()
    vmem_limit = max(16 << 20, min(int(0.72 * vmem_cap), 100 << 20))
    budget = (vmem_budget_bytes if vmem_budget_bytes is not None
              else int(0.6 * vmem_limit))

    # Column tile: keep the whole weight resident when its (double-buffered)
    # footprint fits in ~1/3 of the budget; otherwise tile N in 128-multiples.
    if n_dim <= 128 or 2 * k_dim * n_dim * itemsize <= budget // 3:
        tn = n_dim
    else:
        tn = (budget // 3) // (2 * k_dim * itemsize)
        tn = max(128, (tn // 128) * 128)
        tn = min(tn, _round_up(n_dim, 128))
        if tn >= n_dim:
            tn = n_dim
    n_steps = pl.cdiv(n_dim, tn)

    # Row tile: as big as the remaining budget allows (multiple of 8).
    # TODO(synk): single-buffer (pl.Buffered(1)) / scratch-preload the constant
    # weight block instead of budgeting two pipeline buffers for it.
    w_tile_bytes = 2 * k_dim * min(tn, n_dim) * itemsize
    per_row = 2 * (k_dim + min(tn, n_dim)) * itemsize      # dbl-buffered in+out
    tm_cap = max(8, ((budget - w_tile_bytes) // per_row) // 8 * 8)
    tm_cap = min(tm_cap, 8192)
    if mp <= 8:
        tm = mp
    else:
        tm = min(tm_cap, _round_up(mp, 8))
        # Balanced multi-step split so multi-TensorCore chips (v7x) keep both
        # cores busy; no forced split on single-core v5e/v6e.
        num_cores = _tpu_num_tensorcores()
        min_steps = 2 * num_cores
        if (num_cores > 1 and n_steps * pl.cdiv(mp, tm) < min_steps
                and mp >= 8 * min_steps):
            tm = min(tm, max(8, _round_up(pl.cdiv(mp, min_steps), 8)))
    m_steps = pl.cdiv(mp, tm)

    cost = pl.CostEstimate(
        flops=2 * mp * k_dim * n_dim,
        transcendentals=0,
        bytes_accessed=int(mp * k_dim * itemsize
                           + m_steps * k_dim * n_dim * itemsize
                           + mp * n_dim * itemsize),
    )

    out2d = pl.pallas_call(
        _proportional_kernel,
        out_shape=jax.ShapeDtypeStruct((mp, n_dim), dtype),
        grid_spec=pltpu.PrefetchScalarGridSpec(
            num_scalar_prefetch=0,
            grid=(m_steps, n_steps),
            in_specs=[
                pl.BlockSpec((tm, k_dim), lambda i, j: (i, 0)),
                pl.BlockSpec((k_dim, tn), lambda i, j: (0, j)),
            ],
            out_specs=pl.BlockSpec((tm, tn), lambda i, j: (i, j)),
        ),
        compiler_params=pltpu.CompilerParams(
            # TODO(synk): if an xprof trace shows only one v7x TensorCore
            # running, switch the row axis to pltpu.CORE_PARALLEL.
            dimension_semantics=("parallel", "parallel"),
            vmem_limit_bytes=vmem_limit,
        ),
        cost_estimate=cost,
    )(x2d, w)

    # Unpack lanes -> rows, drop padding, restore leading dims.
    out = out2d.reshape(m_pad, out_dim)[:m].reshape(*lead_shape, out_dim)
    return out


def init_proportional_weights(nodes, key):
    """Deterministic init of the bias-free linear chain (shapes from __init__)."""
    weights = []
    for i in range(len(nodes) - 1):
        key, sub = jax.random.split(key)
        bound = 1.0 / float(nodes[i]) ** 0.5    # mimic torch.nn.Linear uniform
        w = jax.random.uniform(sub, (nodes[i], nodes[i + 1]),
                               dtype=jnp.float32, minval=-bound, maxval=bound)
        weights.append(w)
    return weights


if __name__ == "__main__":
    key = jax.random.PRNGKey(0)

    # ---- Proportional(nodes=[32, 64, 16]) on a small (2, 8, 32) input ------
    nodes = [32, 64, 16]
    key, kx, kw = jax.random.split(key, 3)
    x = jax.random.normal(kx, (2, 8, nodes[0]), dtype=jnp.float32)
    weights = init_proportional_weights(nodes, kw)

    # Exact host reference (same semantics as chained torch.nn.Linear, bias=False).
    ref = np.asarray(x, dtype=np.float32)
    for w in weights:
        ref = ref @ np.asarray(w, dtype=np.float32)

    # (1) f32 operand path (matches the PyTorch module's default dtype).
    w_f32, p_f32 = prepare_proportional_weights(weights, dtype=jnp.float32)
    out = jax.block_until_ready(proportional_forward(x, w_f32, p=p_f32))
    assert out.shape == (2, 8, nodes[-1]), out.shape
    assert np.allclose(np.asarray(out), ref, atol=2e-2, rtol=2e-2), \
        float(np.max(np.abs(np.asarray(out) - ref)))

    # (2) bf16 operand path (halves HBM traffic; f32 MXU accumulation).
    w_bf16, p_bf16 = prepare_proportional_weights(weights, dtype=jnp.bfloat16)
    out_bf16 = jax.block_until_ready(proportional_forward(x, w_bf16, p=p_bf16))
    assert out_bf16.shape == (2, 8, nodes[-1]), out_bf16.shape
    assert np.allclose(np.asarray(out_bf16, dtype=np.float32), ref,
                       atol=6e-2, rtol=6e-2), \
        float(np.max(np.abs(np.asarray(out_bf16, dtype=np.float32) - ref)))

    # (3) Exercise the N-tiled weight + ragged row/col edge blocks by forcing
    #     a tiny tile budget (the per-gen VMEM limit is left untouched).
    nodes2 = [128, 640]
    key, kx2, kw2 = jax.random.split(key, 3)
    x2 = jax.random.normal(kx2, (300, nodes2[0]), dtype=jnp.float32)
    weights2 = init_proportional_weights(nodes2, kw2)
    ref2 = np.asarray(x2, dtype=np.float32) @ np.asarray(weights2[0],
                                                         dtype=np.float32)
    w2, p2 = prepare_proportional_weights(weights2, dtype=jnp.float32)
    out2 = jax.block_until_ready(
        proportional_forward(x2, w2, p=p2, vmem_budget_bytes=1 << 20))
    assert out2.shape == (300, nodes2[1]), out2.shape
    assert np.allclose(np.asarray(out2), ref2, atol=2e-2, rtol=2e-2), \
        float(np.max(np.abs(np.asarray(out2) - ref2)))

    print("KERNEL_OK")
</pallas_src>

<mosaic_0001>
module attributes {stable_mosaic.version = 11 : i64} {
  func.func @_proportional_kernel(%arg0: i32, %arg1: i32, %arg2: memref<4x128xf32, #tpu.memory_space<vmem>>, %arg3: memref<128x64xf32, #tpu.memory_space<vmem>>, %arg4: memref<4x64xf32, #tpu.memory_space<vmem>>) attributes {dimension_semantics = [#tpu.dimension_semantics<parallel>, #tpu.dimension_semantics<parallel>], iteration_bounds = array<i64: 1, 1>, scalar_prefetch = 0 : i64, scratch_operands = 0 : i64, tpu.core_type = #tpu.core_type<tc>, window_params = [{transform_indices = @transform_0, window_bounds = array<i64: 4, 128>}, {transform_indices = @transform_1, window_bounds = array<i64: 128, 64>}, {transform_indices = @transform_2, window_bounds = array<i64: 4, 64>}]} {
    %c0 = arith.constant 0 : index
    %c0_0 = arith.constant 0 : index
    %0 = vector.load %arg2[%c0, %c0_0] : memref<4x128xf32, #tpu.memory_space<vmem>>, vector<4x128xf32>
    %c0_1 = arith.constant 0 : index
    %c0_2 = arith.constant 0 : index
    %1 = vector.load %arg3[%c0_1, %c0_2] : memref<128x64xf32, #tpu.memory_space<vmem>>, vector<128x64xf32>
    %cst = arith.constant dense<0.000000e+00> : vector<4x64xf32>
    %2 = tpu.matmul %0, %1, %cst {dimension_numbers = #tpu.dot_dimension_numbers<[1], [0], [0], [1], [0, 0, 1, 1], [], []>} : vector<4x128xf32>, vector<128x64xf32>, vector<4x64xf32> -> vector<4x64xf32>
    %c0_3 = arith.constant 0 : index
    %c0_4 = arith.constant 0 : index
    %3 = vector.load %arg4[%c0_3, %c0_4] : memref<4x64xf32, #tpu.memory_space<vmem>>, vector<4x64xf32>
    tpu.vector_store %arg4[%c0_3, %c0_4], %2 {strides = array<i32>} : memref<4x64xf32, #tpu.memory_space<vmem>>, vector<4x64xf32>,
    return
  }
  func.func @transform_0(%arg0: i32, %arg1: i32) -> (i32, i32) {
    %c0_i32 = arith.constant 0 : i32
    %c0_i32_0 = arith.constant 0 : i32
    return %arg0, %c0_i32 : i32, i32
  }
  func.func @transform_1(%arg0: i32, %arg1: i32) -> (i32, i32) {
    %c0_i32 = arith.constant 0 : i32
    %c0_i32_0 = arith.constant 0 : i32
    return %c0_i32, %arg1 : i32, i32
  }
  func.func @transform_2(%arg0: i32, %arg1: i32) -> (i32, i32) {
    %c0_i32 = arith.constant 0 : i32
    return %arg0, %arg1 : i32, i32
  }
}

</mosaic_0001>

<bundles_post_ra>
// kernel: proportional_forward.1
= control target key start
LH: loop header
LB: loop body
LE: loop exit
PB: predicated region body
PF: predicated region fallthrough
CT: control target
= control target key end

     0   :  { %v183_v0 = vmov 0.0|0.0   ;;  %vm184_vm0 = vmmov 0   ;;  %v185_v4 = vmov 0.0   ;;  %vm98_vm1 = vcmask 519168   ;;  %s255_s1 = inlined_call_operand.vmem [shape: f32[128,64], index: 1, kind: input, shape index: {}]   ;;  %s256_s0 = inlined_call_operand.vmem [shape: f32[4,128], index: 0, kind: input, shape index: {}]   ;;  %s257_s2 = inlined_call_operand.vmem [shape: f32[4,64], index: 2, kind: output, shape index: {}]  }
   0x1   :  { %156 = vmatprep.subr.bf16.mxu0 %v183_v0  ;;  %v12_v1 = vld [vmem:[%s255_s1] sm:$0xff]  ;;  %v13_v2 = vld [vmem:[%s255_s1 + $0x8] sm:$0xff]  ;;  %v14_v3 = vld [vmem:[%s255_s1 + $0x10] sm:$0xff]  ;;  %153 = vmatprep.mubr.msk.f32.mxu0 %vm184_vm0, %v185_v4 }
   0x2   :  { %v157_v5 = vpack.c.bf16 %v13_v2, %v12_v1  ;;  %v15_v6 = vld [vmem:[%s255_s1 + $0x18] sm:$0xff]  ;;  %v16_v8 = vld [vmem:[%s255_s1 + $0x20] sm:$0xff]  ;;  %v17_v9 = vld [vmem:[%s255_s1 + $0x28] sm:$0xff] }
   0x3   :  { %v160_v7 = vpack.c.bf16 %v15_v6, %v14_v3  ;;  %v163_v10 = vpack.c.bf16 %v17_v9, %v16_v8  ;;  %v18_v11 = vld [vmem:[%s255_s1 + $0x30] sm:$0xff]  ;;  %v19_v12 = vld [vmem:[%s255_s1 + $0x38] sm:$0xff]  ;;  %v20_v14 = vld [vmem:[%s255_s1 + $0x40] sm:$0xff] }
   0x4   :  { %158 = vmatpush3.bf16.msra.mxu0 %v157_v5  ;;  %v166_v13 = vpack.c.bf16 %v19_v12, %v18_v11  ;;  %v21_v15 = vld [vmem:[%s255_s1 + $0x48] sm:$0xff]  ;;  %v22_v17 = vld [vmem:[%s255_s1 + $0x50] sm:$0xff]  ;;  %v23_v18 = vld [vmem:[%s255_s1 + $0x58] sm:$0xff] }
   0x5   :  { %159 = vmatprep.subr.bf16.mxu0 %v183_v0  ;;  %v169_v16 = vpack.c.bf16 %v21_v15, %v20_v14  ;;  %v172_v19 = vpack.c.bf16 %v23_v18, %v22_v17  ;;  %v24_v20 = vld [vmem:[%s255_s1 + $0x60] sm:$0xff]  ;;  %v25_v21 = vld [vmem:[%s255_s1 + $0x68] sm:$0xff]  ;;  %v26_v23 = vld [vmem:[%s255_s1 + $0x70] sm:$0xff] }
   0x6   :  { %v175_v22 = vpack.c.bf16 %v25_v21, %v24_v20  ;;  %v27_v24 = vld [vmem:[%s255_s1 + $0x78] sm:$0xff]  ;;  %v11_v26 = vld [vmem:[%s256_s0] sm:$0xf] }
   0x7   :  { %v178_v25 = vpack.c.bf16 %v27_v24, %v26_v23 }
   0x8   :  { %161 = vmatpush3.bf16.msra.mxu0 %v160_v7 }
   0x9   :  { %162 = vmatprep.subr.bf16.mxu0 %v183_v0 }
   0xc   :  { %164 = vmatpush3.bf16.msra.mxu0 %v163_v10 }
   0xd   :  { %165 = vmatprep.subr.bf16.mxu0 %v183_v0 }
  0x10   :  { %167 = vmatpush3.bf16.msra.mxu0 %v166_v13 }
  0x11   :  { %168 = vmatprep.subr.bf16.mxu0 %v183_v0 }
  0x14   :  { %170 = vmatpush3.bf16.msra.mxu0 %v169_v16 }
  0x15   :  { %171 = vmatprep.subr.bf16.mxu0 %v183_v0 }
  0x18   :  { %173 = vmatpush3.bf16.msra.mxu0 %v172_v19 }
  0x19   :  { %174 = vmatprep.subr.bf16.mxu0 %v183_v0 }
  0x1c   :  { %176 = vmatpush3.bf16.msra.mxu0 %v175_v22 }
  0x1d   :  { %177 = vmatprep.subr.bf16.mxu0 %v183_v0 }
  0x20   :  { %179 = vmatpush3.bf16.msra.mxu0 %v178_v25 }
  0x23   :  { %154 = vmatmul.mubr.f32.vlgmr.msra.gmra.mrb[0].mxu0 %v11_v26 }
  0xf6   :  { %v94_v27 = vpop.f32.mrb[0].mxu0 }
  0xf7   :  { %99 = vst.msk [vmem:[%s257_s2] sm:$0xf] %vm98_vm1, %v94_v27  ;;  %v155_v28 = vpop.f32.mrb[1].mxu0 }

</bundles_post_ra>
